<compile_context>
chip_gen: v5e
topology: v5e:2x2
jax: 0.10.0
libtpu: 0.0.40
codegen_flags: <defaults>
</compile_context>

<pallas_src>
import jax
import jax.numpy as jnp
import numpy as np
from jax.experimental import pallas as pl
from jax.experimental.pallas import tpu as pltpu

K_CONV = 9
DIL = 8
COUT = 3
HIDDEN = 512  # fc.in_features in the torch module


def my_custom_model_forward(x, params, *, batch_block=2):
    """x: (B, 1, H, W) f32.  Returns (logits (B, C), pred (C,))."""
    conv_w, conv_b, w1, b1, w2, b2 = params
    B, Cin, H, W = x.shape
    C = w2.shape[1]
    assert Cin == 1
    Ho, Wo = H - (K_CONV - 1) * DIL, W - (K_CONV - 1) * DIL
    assert Ho > 0 and Wo > 0
    # Parity-plane pooling algebra needs even conv-output dims and even dilation (true
    # for the shapes used here; torch MaxPool2d(2) would silently drop odd remainders).
    assert Ho % 2 == 0 and Wo % 2 == 0 and DIL % 2 == 0
    PH, PW = Ho // 2, Wo // 2
    F1 = PH * PW                       # per-channel flattened pooled features
    FLAT = COUT * F1
    assert w1.shape == (FLAT, HIDDEN)
    CP = ((C + 127) // 128) * 128      # lane-dense padded class width

    BB = min(batch_block, B)           # batch tile (grid axis, marked "parallel")
    assert B % BB == 0, "batch must be divisible by the batch tile"
    GB = B // BB
    KK = K_CONV * K_CONV
    BF = BB * F1                       # lanes per parity group
    LW = 4 * BF                        # lane width of one im2col tile

    # ---------------- host-side layout plumbing (pure XLA, outside the kernel) -------
    x2 = x[:, 0].astype(jnp.float32)                                   # (B, H, W)
    # parity planes: planes[s, r, b, i, j] = x2[b, 2i+s, 2j+r]
    planes = jnp.transpose(x2.reshape(B, H // 2, 2, W // 2, 2), (2, 4, 0, 1, 3))
    rows = jnp.arange(K_CONV)[:, None] * (DIL // 2) + jnp.arange(PH)[None, :]  # (K, PH)
    cols = jnp.arange(K_CONV)[:, None] * (DIL // 2) + jnp.arange(PW)[None, :]  # (K, PW)
    g = planes[:, :, :, rows, :]                                       # (2,2,B,K,PH,W/2)
    g = g[..., cols]                                                   # (2,2,B,K,PH,K,PW)
    # g[s,r,b,ki,p,kj,q] = x2[b, 8*ki + 2p + s, 8*kj + 2q + r]
    # -> im2col slab per batch tile: zb[blk, ki*K+kj, (2s+r)*BB*F1 + b_local*F1 + p*PW+q]
    zb = jnp.transpose(g, (2, 3, 5, 0, 1, 4, 6))                       # (B,K,K,2,2,PH,PW)
    zb = zb.reshape(GB, BB, KK, 4, F1)
    zb = jnp.transpose(zb, (0, 2, 3, 1, 4)).reshape(GB, KK, LW).astype(jnp.bfloat16)

    cw = conv_w.reshape(COUT, KK).astype(jnp.bfloat16)                 # (COUT, 81)
    cb = conv_b.reshape(COUT, 1).astype(jnp.float32)                   # (COUT, 1)
    w1b = w1.astype(jnp.bfloat16)                                      # (FLAT, 512)
    b1r = b1.reshape(1, HIDDEN).astype(jnp.float32)                    # (1, 512)
    w2p = jnp.pad(w2.astype(jnp.bfloat16), ((0, 0), (0, CP - C)))      # (512, CP)
    b2p = jnp.pad(b2.reshape(1, C).astype(jnp.float32), ((0, 0), (0, CP - C)))  # (1, CP)

    # ---------------------------------- fused kernel ---------------------------------
    def kernel(cw_ref, cb_ref, zb_ref, w1_ref, b1_ref, w2_ref, b2_ref,
               logits_ref, psum_ref, p_ref):
        # layer0 conv: one bf16 MXU matmul (f32 accumulate), then bias + ReLU.
        y = jnp.dot(cw_ref[...], zb_ref[0], preferred_element_type=jnp.float32)
        y = jnp.maximum(y + cb_ref[...], 0.0)                          # (COUT, 4*BB*F1)

        # 2x2/stride-2 max-pool == elementwise max over the 4 parity lane chunks.
        pooled = jnp.maximum(jnp.maximum(y[:, 0:BF], y[:, BF:2 * BF]),
                             jnp.maximum(y[:, 2 * BF:3 * BF], y[:, 3 * BF:4 * BF]))

        # Flatten to torch order (b, c*F1 + f): small lane->sublane relayout via the
        # (BB, FLAT) VMEM scratch, channel slabs at static lane offsets 0, F1, 2*F1.
        for c in range(COUT):
            for b in range(BB):
                p_ref[b:b + 1, c * F1:(c + 1) * F1] = \
                    pooled[c:c + 1, b * F1:(b + 1) * F1]

        # Stand-in backbone (FLAT->512 + ReLU) and fc: ONE bf16 MXU matmul each.
        # TODO(synk): stand-in for the unspecified pretrained backbone.
        h = jnp.dot(p_ref[...].astype(jnp.bfloat16), w1_ref[...],
                    preferred_element_type=jnp.float32)
        h = jnp.maximum(h + b1_ref[...], 0.0)                          # (BB, 512)
        logits = jnp.dot(h.astype(jnp.bfloat16), w2_ref[...],
                         preferred_element_type=jnp.float32) + b2_ref[...]
        logits_ref[0] = logits                                         # (BB, CP)

        # Per-tile sum of relu(logits); the cross-tile reduction happens outside the
        # kernel because the batch grid axis is "parallel" (megacore-safe on v7x).
        psum_ref[0] = jnp.sum(jnp.maximum(logits, 0.0), axis=0, keepdims=True)

    logits_pad, psum_pad = pl.pallas_call(
        kernel,
        out_shape=(jax.ShapeDtypeStruct((GB, BB, CP), jnp.float32),
                   jax.ShapeDtypeStruct((GB, 1, CP), jnp.float32)),
        grid_spec=pltpu.PrefetchScalarGridSpec(
            num_scalar_prefetch=0,
            grid=(GB,),
            in_specs=[
                pl.BlockSpec((COUT, KK), lambda i: (0, 0)),       # conv weights
                pl.BlockSpec((COUT, 1), lambda i: (0, 0)),        # conv bias
                pl.BlockSpec((1, KK, LW), lambda i: (i, 0, 0)),   # im2col batch tile
                pl.BlockSpec((FLAT, HIDDEN), lambda i: (0, 0)),   # backbone weights
                pl.BlockSpec((1, HIDDEN), lambda i: (0, 0)),      # backbone bias
                pl.BlockSpec((HIDDEN, CP), lambda i: (0, 0)),     # fc weights (padded)
                pl.BlockSpec((1, CP), lambda i: (0, 0)),          # fc bias (padded)
            ],
            out_specs=(
                pl.BlockSpec((1, BB, CP), lambda i: (i, 0, 0)),   # logits per tile
                pl.BlockSpec((1, 1, CP), lambda i: (i, 0, 0)),    # relu-logit sums
            ),
            scratch_shapes=[pltpu.VMEM((BB, FLAT), jnp.float32)],
        ),
        compiler_params=pltpu.CompilerParams(
            dimension_semantics=("parallel",),
            vmem_limit_bytes=32 * 1024 * 1024),
    )(cw, cb, zb, w1b, b1r, w2p, b2p)

    logits = logits_pad.reshape(B, CP)[:, :C]
    # pred = 1 - prod_b exp(-1e-3 * relu(logits)) == 1 - exp(-1e-3 * sum_b relu(logits))
    pred = 1.0 - jnp.exp(-0.001 * jnp.sum(psum_pad, axis=(0, 1)))[:C]
    return logits, pred


# -------------------------------------------------------------------------------------
# Pure-JAX f32 reference (straightforward math) for a smoke-test comparison.
# -------------------------------------------------------------------------------------
def reference_forward(x, params):
    conv_w, conv_b, w1, b1, w2, b2 = params
    B, _, H, W = x.shape
    Ho, Wo = H - (K_CONV - 1) * DIL, W - (K_CONV - 1) * DIL
    xs = x[:, 0]
    chans = []
    for c in range(COUT):
        acc = jnp.zeros((B, Ho, Wo), jnp.float32)
        for ki in range(K_CONV):
            for kj in range(K_CONV):
                acc = acc + conv_w[c, 0, ki, kj] * xs[:, ki * DIL:ki * DIL + Ho,
                                                      kj * DIL:kj * DIL + Wo]
        chans.append(acc + conv_b[c])
    y = jnp.maximum(jnp.stack(chans, axis=1), 0.0)
    p = jnp.maximum(jnp.maximum(y[:, :, 0::2, 0::2], y[:, :, 0::2, 1::2]),
                    jnp.maximum(y[:, :, 1::2, 0::2], y[:, :, 1::2, 1::2]))
    flat = p.reshape(B, -1)
    h = jnp.maximum(flat @ w1 + b1, 0.0)
    logits = h @ w2 + b2
    pred = 1.0 - jnp.prod(jnp.exp(jnp.maximum(logits, 0.0) * (-0.001)), axis=0)
    return logits, pred


if __name__ == "__main__":
    B, H, W = 4, 72, 72          # 72 - (9-1)*8 = 8 -> pool -> 4x4 ; FLAT = 3*4*4 = 48
    num_classes = 10
    FLAT = COUT * ((H - (K_CONV - 1) * DIL) // 2) * ((W - (K_CONV - 1) * DIL) // 2)

    keys = jax.random.split(jax.random.PRNGKey(0), 7)
    x = jax.random.normal(keys[0], (B, 1, H, W), jnp.float32)
    conv_w = jax.random.normal(keys[1], (COUT, 1, K_CONV, K_CONV), jnp.float32) * 0.05
    conv_b = jax.random.normal(keys[2], (COUT,), jnp.float32) * 0.05
    w1 = jax.random.normal(keys[3], (FLAT, HIDDEN), jnp.float32) * 0.05   # stand-in backbone
    b1 = jax.random.normal(keys[4], (HIDDEN,), jnp.float32) * 0.05
    w2 = jax.random.normal(keys[5], (HIDDEN, num_classes), jnp.float32) * 0.05  # fc
    b2 = jax.random.normal(keys[6], (num_classes,), jnp.float32) * 0.05
    params = (conv_w, conv_b, w1, b1, w2, b2)

    logits, pred = jax.jit(my_custom_model_forward)(x, params)   # batch_block=2 -> grid=(2,)
    jax.block_until_ready(logits)
    jax.block_until_ready(pred)

    ref_logits, ref_pred = reference_forward(x, params)
    # Tolerances account for bf16 MXU operands (accumulation is f32 throughout).
    np.testing.assert_allclose(np.asarray(logits), np.asarray(ref_logits),
                               rtol=5e-2, atol=1e-2)
    np.testing.assert_allclose(np.asarray(pred), np.asarray(ref_pred),
                               rtol=5e-2, atol=1e-4)
    assert logits.shape == (B, num_classes) and pred.shape == (num_classes,)

    print("KERNEL_OK")
</pallas_src>

<mosaic_0001>
module attributes {stable_mosaic.version = 11 : i64} {
  func.func @kernel(%arg0: i32, %arg1: memref<3x81xbf16, #tpu.memory_space<vmem>>, %arg2: memref<3x1xf32, #tpu.memory_space<vmem>>, %arg3: memref<1x81x128xbf16, #tpu.memory_space<vmem>>, %arg4: memref<48x512xbf16, #tpu.memory_space<vmem>>, %arg5: memref<1x512xf32, #tpu.memory_space<vmem>>, %arg6: memref<512x128xbf16, #tpu.memory_space<vmem>>, %arg7: memref<1x128xf32, #tpu.memory_space<vmem>>, %arg8: memref<1x2x128xf32, #tpu.memory_space<vmem>>, %arg9: memref<1x1x128xf32, #tpu.memory_space<vmem>>, %arg10: memref<2x48xf32, #tpu.memory_space<vmem>>) attributes {dimension_semantics = [#tpu.dimension_semantics<parallel>], iteration_bounds = array<i64: 2>, scalar_prefetch = 0 : i64, scratch_operands = 1 : i64, tpu.core_type = #tpu.core_type<tc>, window_params = [{pipeline_mode = #tpu.pipeline_mode<synchronous>, transform_indices = @transform_0, window_bounds = array<i64: 3, 81>}, {pipeline_mode = #tpu.pipeline_mode<synchronous>, transform_indices = @transform_1, window_bounds = array<i64: 3, 1>}, {transform_indices = @transform_2, window_bounds = array<i64: 1, 81, 128>}, {pipeline_mode = #tpu.pipeline_mode<synchronous>, transform_indices = @transform_3, window_bounds = array<i64: 48, 512>}, {pipeline_mode = #tpu.pipeline_mode<synchronous>, transform_indices = @transform_4, window_bounds = array<i64: 1, 512>}, {pipeline_mode = #tpu.pipeline_mode<synchronous>, transform_indices = @transform_5, window_bounds = array<i64: 512, 128>}, {pipeline_mode = #tpu.pipeline_mode<synchronous>, transform_indices = @transform_6, window_bounds = array<i64: 1, 128>}, {transform_indices = @transform_7, window_bounds = array<i64: 1, 2, 128>}, {transform_indices = @transform_8, window_bounds = array<i64: 1, 1, 128>}]} {
    %c0 = arith.constant 0 : index
    %c0_0 = arith.constant 0 : index
    %0 = vector.load %arg1[%c0, %c0_0] : memref<3x81xbf16, #tpu.memory_space<vmem>>, vector<3x81xbf16>
    %c0_1 = arith.constant 0 : index
    %c0_2 = arith.constant 0 : index
    %c0_3 = arith.constant 0 : index
    %1 = vector.load %arg3[%c0_1, %c0_2, %c0_3] : memref<1x81x128xbf16, #tpu.memory_space<vmem>>, vector<1x81x128xbf16>
    %2 = vector.shape_cast %1 : vector<1x81x128xbf16> to vector<81x128xbf16>
    %cst = arith.constant dense<0.000000e+00> : vector<3x128xf32>
    %3 = tpu.matmul %0, %2, %cst {dimension_numbers = #tpu.dot_dimension_numbers<[1], [0], [0], [1], [0, 0, 1, 1], [], []>} : vector<3x81xbf16>, vector<81x128xbf16>, vector<3x128xf32> -> vector<3x128xf32>
    %c0_4 = arith.constant 0 : index
    %c0_5 = arith.constant 0 : index
    %4 = vector.load %arg2[%c0_4, %c0_5] : memref<3x1xf32, #tpu.memory_space<vmem>>, vector<3x1xf32>
    %5 = vector.broadcast %4 : vector<3x1xf32> to vector<3x128xf32>
    %6 = arith.addf %3, %5 : vector<3x128xf32>
    %cst_6 = arith.constant 0.000000e+00 : f32
    %7 = vector.broadcast %cst_6 : f32 to vector<3x128xf32>
    %8 = arith.maximumf %6, %7 : vector<3x128xf32>
    %9 = vector.extract_strided_slice %8 {offsets = [0, 0], sizes = [3, 32], strides = [1, 1]} : vector<3x128xf32> to vector<3x32xf32>
    %10 = vector.extract_strided_slice %8 {offsets = [0, 32], sizes = [3, 32], strides = [1, 1]} : vector<3x128xf32> to vector<3x32xf32>
    %11 = arith.maximumf %9, %10 : vector<3x32xf32>
    %12 = vector.extract_strided_slice %8 {offsets = [0, 64], sizes = [3, 32], strides = [1, 1]} : vector<3x128xf32> to vector<3x32xf32>
    %13 = vector.extract_strided_slice %8 {offsets = [0, 96], sizes = [3, 32], strides = [1, 1]} : vector<3x128xf32> to vector<3x32xf32>
    %14 = arith.maximumf %12, %13 : vector<3x32xf32>
    %15 = arith.maximumf %11, %14 : vector<3x32xf32>
    %16 = vector.extract_strided_slice %15 {offsets = [0, 0], sizes = [1, 16], strides = [1, 1]} : vector<3x32xf32> to vector<1x16xf32>
    %c0_7 = arith.constant 0 : index
    %c0_8 = arith.constant 0 : index
    %17 = vector.load %arg10[%c0_7, %c0_8] : memref<2x48xf32, #tpu.memory_space<vmem>>, vector<1x16xf32>
    tpu.vector_store %arg10[%c0_7, %c0_8], %16 {strides = array<i32>} : memref<2x48xf32, #tpu.memory_space<vmem>>, vector<1x16xf32>,
    %18 = vector.extract_strided_slice %15 {offsets = [0, 16], sizes = [1, 16], strides = [1, 1]} : vector<3x32xf32> to vector<1x16xf32>
    %c1 = arith.constant 1 : index
    %c0_9 = arith.constant 0 : index
    %19 = vector.load %arg10[%c1, %c0_9] : memref<2x48xf32, #tpu.memory_space<vmem>>, vector<1x16xf32>
    tpu.vector_store %arg10[%c1, %c0_9], %18 {strides = array<i32>} : memref<2x48xf32, #tpu.memory_space<vmem>>, vector<1x16xf32>,
    %20 = vector.extract_strided_slice %15 {offsets = [1, 0], sizes = [1, 16], strides = [1, 1]} : vector<3x32xf32> to vector<1x16xf32>
    %c0_10 = arith.constant 0 : index
    %c16 = arith.constant 16 : index
    %21 = vector.load %arg10[%c0_10, %c16] : memref<2x48xf32, #tpu.memory_space<vmem>>, vector<1x16xf32>
    tpu.vector_store %arg10[%c0_10, %c16], %20 {strides = array<i32>} : memref<2x48xf32, #tpu.memory_space<vmem>>, vector<1x16xf32>,
    %22 = vector.extract_strided_slice %15 {offsets = [1, 16], sizes = [1, 16], strides = [1, 1]} : vector<3x32xf32> to vector<1x16xf32>
    %c1_11 = arith.constant 1 : index
    %c16_12 = arith.constant 16 : index
    %23 = vector.load %arg10[%c1_11, %c16_12] : memref<2x48xf32, #tpu.memory_space<vmem>>, vector<1x16xf32>
    tpu.vector_store %arg10[%c1_11, %c16_12], %22 {strides = array<i32>} : memref<2x48xf32, #tpu.memory_space<vmem>>, vector<1x16xf32>,
    %24 = vector.extract_strided_slice %15 {offsets = [2, 0], sizes = [1, 16], strides = [1, 1]} : vector<3x32xf32> to vector<1x16xf32>
    %c0_13 = arith.constant 0 : index
    %c32 = arith.constant 32 : index
    %25 = vector.load %arg10[%c0_13, %c32] : memref<2x48xf32, #tpu.memory_space<vmem>>, vector<1x16xf32>
    tpu.vector_store %arg10[%c0_13, %c32], %24 {strides = array<i32>} : memref<2x48xf32, #tpu.memory_space<vmem>>, vector<1x16xf32>,
    %26 = vector.extract_strided_slice %15 {offsets = [2, 16], sizes = [1, 16], strides = [1, 1]} : vector<3x32xf32> to vector<1x16xf32>
    %c1_14 = arith.constant 1 : index
    %c32_15 = arith.constant 32 : index
    %27 = vector.load %arg10[%c1_14, %c32_15] : memref<2x48xf32, #tpu.memory_space<vmem>>, vector<1x16xf32>
    tpu.vector_store %arg10[%c1_14, %c32_15], %26 {strides = array<i32>} : memref<2x48xf32, #tpu.memory_space<vmem>>, vector<1x16xf32>,
    %c0_16 = arith.constant 0 : index
    %c0_17 = arith.constant 0 : index
    %28 = vector.load %arg10[%c0_16, %c0_17] : memref<2x48xf32, #tpu.memory_space<vmem>>, vector<2x48xf32>
    %29 = arith.truncf %28 : vector<2x48xf32> to vector<2x48xbf16>
    %c0_18 = arith.constant 0 : index
    %c0_19 = arith.constant 0 : index
    %30 = vector.load %arg4[%c0_18, %c0_19] : memref<48x512xbf16, #tpu.memory_space<vmem>>, vector<48x512xbf16>
    %cst_20 = arith.constant dense<0.000000e+00> : vector<2x512xf32>
    %31 = tpu.matmul %29, %30, %cst_20 {dimension_numbers = #tpu.dot_dimension_numbers<[1], [0], [0], [1], [0, 0, 1, 1], [], []>} : vector<2x48xbf16>, vector<48x512xbf16>, vector<2x512xf32> -> vector<2x512xf32>
    %c0_21 = arith.constant 0 : index
    %c0_22 = arith.constant 0 : index
    %32 = vector.load %arg5[%c0_21, %c0_22] : memref<1x512xf32, #tpu.memory_space<vmem>>, vector<1x512xf32>
    %33 = vector.broadcast %32 : vector<1x512xf32> to vector<2x512xf32>
    %34 = arith.addf %31, %33 : vector<2x512xf32>
    %cst_23 = arith.constant 0.000000e+00 : f32
    %35 = vector.broadcast %cst_23 : f32 to vector<2x512xf32>
    %36 = arith.maximumf %34, %35 : vector<2x512xf32>
    %37 = arith.truncf %36 : vector<2x512xf32> to vector<2x512xbf16>
    %c0_24 = arith.constant 0 : index
    %c0_25 = arith.constant 0 : index
    %38 = vector.load %arg6[%c0_24, %c0_25] : memref<512x128xbf16, #tpu.memory_space<vmem>>, vector<512x128xbf16>
    %cst_26 = arith.constant dense<0.000000e+00> : vector<2x128xf32>
    %39 = tpu.matmul %37, %38, %cst_26 {dimension_numbers = #tpu.dot_dimension_numbers<[1], [0], [0], [1], [0, 0, 1, 1], [], []>} : vector<2x512xbf16>, vector<512x128xbf16>, vector<2x128xf32> -> vector<2x128xf32>
    %c0_27 = arith.constant 0 : index
    %c0_28 = arith.constant 0 : index
    %40 = vector.load %arg7[%c0_27, %c0_28] : memref<1x128xf32, #tpu.memory_space<vmem>>, vector<1x128xf32>
    %41 = vector.broadcast %40 : vector<1x128xf32> to vector<2x128xf32>
    %42 = arith.addf %39, %41 : vector<2x128xf32>
    %c0_29 = arith.constant 0 : index
    %c0_30 = arith.constant 0 : index
    %c0_31 = arith.constant 0 : index
    %43 = vector.load %arg8[%c0_29, %c0_30, %c0_31] : memref<1x2x128xf32, #tpu.memory_space<vmem>>, vector<1x2x128xf32>
    %44 = vector.shape_cast %43 : vector<1x2x128xf32> to vector<2x128xf32>
    %45 = vector.shape_cast %42 : vector<2x128xf32> to vector<1x2x128xf32>
    tpu.vector_store %arg8[%c0_29, %c0_30, %c0_31], %45 {strides = array<i32>} : memref<1x2x128xf32, #tpu.memory_space<vmem>>, vector<1x2x128xf32>,
    %cst_32 = arith.constant 0.000000e+00 : f32
    %46 = vector.broadcast %cst_32 : f32 to vector<2x128xf32>
    %47 = arith.maximumf %42, %46 : vector<2x128xf32>
    %cst_33 = arith.constant dense<0.000000e+00> : vector<128xf32>
    %48 = vector.multi_reduction <add>, %47, %cst_33 [0] : vector<2x128xf32> to vector<128xf32>
    %49 = vector.shape_cast %48 : vector<128xf32> to vector<1x128xf32>
    %c0_34 = arith.constant 0 : index
    %c0_35 = arith.constant 0 : index
    %c0_36 = arith.constant 0 : index
    %50 = vector.load %arg9[%c0_34, %c0_35, %c0_36] : memref<1x1x128xf32, #tpu.memory_space<vmem>>, vector<1x1x128xf32>
    %51 = vector.shape_cast %50 : vector<1x1x128xf32> to vector<1x128xf32>
    %52 = vector.shape_cast %49 : vector<1x128xf32> to vector<1x1x128xf32>
    tpu.vector_store %arg9[%c0_34, %c0_35, %c0_36], %52 {strides = array<i32>} : memref<1x1x128xf32, #tpu.memory_space<vmem>>, vector<1x1x128xf32>,
    return
  }
  func.func @transform_0(%arg0: i32) -> (i32, i32) {
    %c0_i32 = arith.constant 0 : i32
    %c0_i32_0 = arith.constant 0 : i32
    %c0_i32_1 = arith.constant 0 : i32
    return %c0_i32, %c0_i32_0 : i32, i32
  }
  func.func @transform_1(%arg0: i32) -> (i32, i32) {
    %c0_i32 = arith.constant 0 : i32
    %c0_i32_0 = arith.constant 0 : i32
    %c0_i32_1 = arith.constant 0 : i32
    return %c0_i32, %c0_i32_0 : i32, i32
  }
  func.func @transform_2(%arg0: i32) -> (i32, i32, i32) {
    %c0_i32 = arith.constant 0 : i32
    %c0_i32_0 = arith.constant 0 : i32
    %c0_i32_1 = arith.constant 0 : i32
    return %arg0, %c0_i32, %c0_i32_0 : i32, i32, i32
  }
  func.func @transform_3(%arg0: i32) -> (i32, i32) {
    %c0_i32 = arith.constant 0 : i32
    %c0_i32_0 = arith.constant 0 : i32
    %c0_i32_1 = arith.constant 0 : i32
    return %c0_i32, %c0_i32_0 : i32, i32
  }
  func.func @transform_4(%arg0: i32) -> (i32, i32) {
    %c0_i32 = arith.constant 0 : i32
    %c0_i32_0 = arith.constant 0 : i32
    %c0_i32_1 = arith.constant 0 : i32
    return %c0_i32, %c0_i32_0 : i32, i32
  }
  func.func @transform_5(%arg0: i32) -> (i32, i32) {
    %c0_i32 = arith.constant 0 : i32
    %c0_i32_0 = arith.constant 0 : i32
    %c0_i32_1 = arith.constant 0 : i32
    return %c0_i32, %c0_i32_0 : i32, i32
  }
  func.func @transform_6(%arg0: i32) -> (i32, i32) {
    %c0_i32 = arith.constant 0 : i32
    %c0_i32_0 = arith.constant 0 : i32
    %c0_i32_1 = arith.constant 0 : i32
    return %c0_i32, %c0_i32_0 : i32, i32
  }
  func.func @transform_7(%arg0: i32) -> (i32, i32, i32) {
    %c0_i32 = arith.constant 0 : i32
    %c0_i32_0 = arith.constant 0 : i32
    %c0_i32_1 = arith.constant 0 : i32
    return %arg0, %c0_i32, %c0_i32_0 : i32, i32, i32
  }
  func.func @transform_8(%arg0: i32) -> (i32, i32, i32) {
    %c0_i32 = arith.constant 0 : i32
    %c0_i32_0 = arith.constant 0 : i32
    %c0_i32_1 = arith.constant 0 : i32
    return %arg0, %c0_i32, %c0_i32_0 : i32, i32, i32
  }
}

</mosaic_0001>

<bundles_post_ra>
// kernel: my_custom_model_forward.1
= control target key start
LH: loop header
LB: loop body
LE: loop exit
PB: predicated region body
PF: predicated region fallthrough
CT: control target
= control target key end

     0   :  { %14 = vsyncpa [#allocation4], 0  ;;  %s1702_s0 = inlined_call_operand.vmem [shape: bf16[3,81], index: 0, kind: input, shape index: {}]   ;;  %s1703_s1 = inlined_call_operand.vmem [shape: f32[3,1], index: 1, kind: input, shape index: {}]   ;;  %s1704_s2 = inlined_call_operand.vmem [shape: bf16[2,81,128], index: 2, kind: input, shape index: {}]   ;;  %s1705_s3 = inlined_call_operand.vmem [shape: bf16[48,512], index: 3, kind: input, shape index: {}]   ;;  %s1706_s4 = inlined_call_operand.vmem [shape: f32[1,512], index: 4, kind: input, shape index: {}]   ;;  %s1707_s5 = inlined_call_operand.vmem [shape: bf16[512,128], index: 5, kind: input, shape index: {}]   ;;  %s1708_s6 = inlined_call_operand.vmem [shape: f32[1,128], index: 6, kind: input, shape index: {}]   ;;  %s1709_s7 = inlined_call_operand.hbm [shape: f32[2,2,128], index: 7, kind: output, shape index: {0}]   ;;  %s1710_s8 = inlined_call_operand.vmem [shape: f32[2,1,128], index: 8, kind: output, shape index: {1}]  }
   0x1   :  { %16 = vsyncpa [#allocation4 + $0x1], 0  ;;  %s1412_s27 = smov 0   ;;  %s1414_s28 = smov 0  }
   0x2   :  { %s1416_s29 = smov 0   ;;  %s1418_s30 = smov 0  }
   0x3 LB: > { %s1433_s9 = sadd.s32 4294967295, %s1359_s30   ;;  %s989_s10 = sadd.s32 4294967294, %s1359_s30   ;;  %s1359_s30 = sphi %s1418_s30, %s1716_s30   ;;  %s1355_s29 = sphi %s1416_s29, %s1715_s29   ;;  %s1351_s28 = sphi %s1414_s28, %s1714_s28   ;;  %s1347_s27 = sphi %s1412_s27, %s1713_s27  }
   0x4   : > { %s1437_s11 = sadd.s32 1, %s1359_s30   ;;  %s181_s12 = sadd.s32 1, %s1355_s29 }
   0x5   : > { %s178_s13 = ssub.s32 %s1359_s30, %s1437_s11  ;;  %p191_p0 = scmp.ne.s32.totalorder %s1355_s29, %s1351_s28 }
   0x6   : > { %p179_p1 = scmp.eq.s32.totalorder %s178_s13, 0  ;;  %p192_p2 = scmp.eq.s32.totalorder %s1433_s9, 1 }
   0x7   : > { %p197_p3 = scmp.ne.s32.totalorder %s1351_s28, %s1347_s27  ;;  %p198_p4 = scmp.eq.s32.totalorder %s989_s10, 1 }
   0x8   : > { %s1448_s14 = scalar_select %p179_p1, %s1355_s29, %s181_s12  }
   0x9   : > { %p1450_p5 = por %p192_p2, %p191_p0  ;;  %p1454_p6 = por %p198_p4, %p197_p3 }
   0xa   : > { %p992_p7 = scmp.ge.s32.totalorder %s1359_s30, 1  ;;  %p268_p8 = scmp.lt.s32.totalorder %s1359_s30, 3 }
   0xc   : > { %p269_p9 = pnand %p992_p7, %p268_p8 }
   0xd   : > { %p305_p10 = scmp.lt.s32.totalorder (!%p269_p9), %s1433_s9, 1  ;;  %s1362_s26 = smov (!%p269_p9), 96  }
   0xe   : > { %272 = sbr.rel (%p269_p9) target bundleno = 838 (0x346), region = 48  ;;  %s1363_s10 = smov (!%p269_p9), 64  }
   0xf   : > { %s1364_s12 = smov (!%p269_p9), 16   ;;  %s1365_s13 = smov (!%p269_p9), 112  }
  0x13   : > { %v1361_v0 = vmov 0   ;;  %s1462_s17 = scalar_select %p305_p10, %s1433_s9, 1  ;;  %v326_v1 = vld [vmem:[%s1703_s1] sm:$0x7]  ;;  %vm369_vm0 = vcmask 1040384   ;;  %vm365_vm1 = vcmask 662528  }
  0x14   : > { %1295 = vset.pattern.permute.xlu0 %v1361_v0  ;;  %v371_v4 = vsel %vm369_vm0, 65535, %v1361_v0  ;;  %v314_v12 = vld [vmem:[%s1702_s0] sm:$0x3]  ;;  %vm399_vm2 = vcmask 122880   ;;  %v1215_v23 = vld [vmem:[%s1705_s3 + $0x4c] sm:$0xf0] }
  0x15   : > { %s1249_s18 = smul.u32 44, %s1462_s17  ;;  %329 = vperm.xlu0 %1295, %v326_v1   ;;  %v1050_v22 = vld [vmem:[%s1705_s3 + $0x40] sm:$0xf]  ;;  %v1213_v24 = vld [vmem:[%s1705_s3 + $0x44] sm:$0xf]  ;;  %vm409_vm3 = vcmask 255105  }
  0x16   : > { %v1051_v25 = vor.u32 %v1215_v23, %v1050_v22  ;;  %v1052_v26 = vld [vmem:[%s1705_s3 + $0x50] sm:$0xf0]  ;;  %v1058_v27 = vld [vmem:[%s1705_s3 + $0x48] sm:$0xf]  ;;  %v1216_v28 = vld [vmem:[%s1705_s3 + $0x54] sm:$0xf0] }
  0x17   : > { %s309_s23 = scalar_lea.vmem %s1704_s2, %s1249_s18  ;;  %s1366_s18 = smov 32   ;;  %v1055_v29 = vor.u32 %v1213_v24, %v1052_v26  ;;  %v1059_v30 = vor.u32 %v1216_v28, %v1058_v27  ;;  %v1034_v31 = vld [vmem:[%s1705_s3 + $0x20] sm:$0xf]  ;;  %v1211_v32 = vld [vmem:[%s1705_s3 + $0x2c] sm:$0xf0]  ;;  %vm415_vm4 = vcmask 387330  }
  0x18   : > { %v325_v2 = vld [vmem:[%s309_s23 + $0x28] sm:$0x1]  ;;  %v1204_v7 = vld [vmem:[%s309_s23 + $0x20] sm:$0xff]  ;;  %v1203_v8 = vld [vmem:[%s309_s23 + $0x18] sm:$0xff]  ;;  %511 = vmatpush.bf16.msra.mxu1 %v1051_v25  ;;  %v1035_v34 = vor.u32 %v1211_v32, %v1034_v31  ;;  %vm502_vm5 = vcmask 392192   ;;  %vm880_vm6 = vcmask 1041408  }
  0x19   : > { %v353_v3 = vunpack.c.l.b16 %v325_v2  ;;  %v1202_v9 = vld [vmem:[%s309_s23 + $0x10] sm:$0xff]  ;;  %v1201_v10 = vld [vmem:[%s309_s23 + $0x8] sm:$0xff]  ;;  %v1200_v11 = vld [vmem:[%s309_s23] sm:$0xff]  ;;  %524 = vmatpush.bf16.msra.mxu2 %v1055_v29  ;;  %537 = vmatpush.bf16.msra.mxu3 %v1059_v30 }
  0x1a   : > { %v1209_v33 = vld [vmem:[%s1705_s3 + $0x24] sm:$0xf]  ;;  %v1036_v35 = vld [vmem:[%s1705_s3 + $0x30] sm:$0xf0]  ;;  %v1042_v36 = vld [vmem:[%s1705_s3 + $0x28] sm:$0xf] }
  0x1b   : > { %v359_v5 = vpack.c.b16 %v353_v3, %v353_v3  ;;  %v1212_v37 = vld [vmem:[%s1705_s3 + $0x34] sm:$0xf0]  ;;  %v1039_v38 = vor.u32 %v1209_v33, %v1036_v35  ;;  %v1018_v40 = vld [vmem:[%s1705_s3] sm:$0xf]  ;;  %v1207_v41 = vld [vmem:[%s1705_s3 + $0xc] sm:$0xf0] }
  0x1c   : > { %v1043_v39 = vor.u32 %v1212_v37, %v1042_v36  ;;  %v1205_v42 = vld [vmem:[%s1705_s3 + $0x4] sm:$0xf]  ;;  %512 = vmatpush.bf16.msra.mxu1 %v1035_v34  ;;  %v1019_v43 = vor.u32 %v1207_v41, %v1018_v40  ;;  %v1020_v44 = vld [vmem:[%s1705_s3 + $0x10] sm:$0xf0]  ;;  %v1026_v45 = vld [vmem:[%s1705_s3 + $0x8] sm:$0xf] }
  0x1d   : > { %v373_v6 = vand.u32 %v371_v4, %v359_v5  ;;  %v1208_v46 = vld [vmem:[%s1705_s3 + $0x14] sm:$0xf0]  ;;  %525 = vmatpush.bf16.msra.mxu2 %v1039_v38  ;;  %v1023_v47 = vor.u32 %v1205_v42, %v1020_v44  ;;  %v1214_v50 = vld [vmem:[%s1705_s3 + $0x4c] sm:$0xf]  ;;  %v1060_v51 = vld [vmem:[%s1705_s3 + $0x58] sm:$0xf0] }
  0x1e   : > { %538 = vmatpush.bf16.msra.mxu3 %v1043_v39  ;;  %v1027_v48 = vor.u32 %v1208_v46, %v1026_v45  ;;  %v1210_v52 = vld [vmem:[%s1705_s3 + $0x2c] sm:$0xf]  ;;  %v1063_v53 = vor.u32 %v1214_v50, %v1060_v51  ;;  %v1044_v54 = vld [vmem:[%s1705_s3 + $0x38] sm:$0xf0]  ;;  %v1223_v63 = vld [vmem:[%s1707_s5 + $0x30] sm:$0xff] }
  0x1f   : > { %377 = vmatpush.bf16.msra.mxu0 %v373_v6  ;;  %v1047_v56 = vor.u32 %v1210_v52, %v1044_v54  ;;  %v1206_v57 = vld [vmem:[%s1705_s3 + $0xc] sm:$0xf]  ;;  %v1028_v58 = vld [vmem:[%s1705_s3 + $0x18] sm:$0xf0]  ;;  %v1231_v0 = vld [vmem:[%s1707_s5 + $0x70] sm:$0xff] }
  0x20   : > { %513 = vmatpush.bf16.msra.mxu1 %v1019_v43  ;;  %v1031_v59 = vor.u32 %v1206_v57, %v1028_v58  ;;  %v1224_v60 = vld [vmem:[%s1707_s5 + $0x38] sm:$0xff]  ;;  %v1239_v2 = vld [vmem:[%s1707_s5 + $0xb0] sm:$0xff]  ;;  %v1222_v3 = vld [vmem:[%s1707_s5 + $0x28] sm:$0xff] }
  0x21   : > { %526 = vmatpush.bf16.msra.mxu2 %v1023_v47  ;;  %v1232_v61 = vld [vmem:[%s1707_s5 + $0x78] sm:$0xff]  ;;  %v1230_v4 = vld [vmem:[%s1707_s5 + $0x68] sm:$0xff]  ;;  %v1221_v6 = vld [vmem:[%s1707_s5 + $0x20] sm:$0xff] }
  0x22   : > { %539 = vmatpush.bf16.msra.mxu3 %v1027_v48  ;;  %v1240_v62 = vld [vmem:[%s1707_s5 + $0xb8] sm:$0xff]  ;;  %v1238_v5 = vld [vmem:[%s1707_s5 + $0xa8] sm:$0xff]  ;;  %v1245_v22 = vld [vmem:[%s1707_s5 + $0xe0] sm:$0xff] }
  0x23   : > { %378 = vmatpush.bf16.msra.mxu0 %v1204_v7  ;;  %v1229_v7 = vld [vmem:[%s1707_s5 + $0x60] sm:$0xff]  ;;  %v1226_v23 = vld [vmem:[%s1707_s5 + $0x48] sm:$0xff]  ;;  %v1244_v25 = vld [vmem:[%s1707_s5 + $0xd8] sm:$0xff] }
  0x24   : > { %550 = vmatpush.bf16.msrb.mxu1 %v1063_v53  ;;  %v1234_v24 = vld [vmem:[%s1707_s5 + $0x88] sm:$0xff]  ;;  %v1225_v26 = vld [vmem:[%s1707_s5 + $0x40] sm:$0xff]  ;;  %v1243_v28 = vld [vmem:[%s1707_s5 + $0xd0] sm:$0xff] }
  0x25   : > { %826 = vmatpush.bf16.msrb.mxu2 %v1224_v60  ;;  %v1233_v27 = vld [vmem:[%s1707_s5 + $0x80] sm:$0xff]  ;;  %v1242_v29 = vld [vmem:[%s1707_s5 + $0xc8] sm:$0xff] }
  0x26   : > { %839 = vmatpush.bf16.msrb.mxu3 %v1232_v61  ;;  %v1241_v30 = vld [vmem:[%s1707_s5 + $0xc0] sm:$0xff] }
  0x27   : > { %379 = vmatpush.bf16.msra.mxu0 %v1203_v8  ;;  %v1237_v8 = vld [vmem:[%s1707_s5 + $0xa0] sm:$0xff] }
  0x28   : > { %551 = vmatpush.bf16.msrb.mxu1 %v1047_v56  ;;  %v432_v31 = vld [vmem:[%s1706_s4] sm:$0xf] }
  0x29   : > { %827 = vmatpush.bf16.msrb.mxu2 %v1223_v63  ;;  %v434_v32 = vperm.slane %v432_v31, 0  ;;  %v435_v36 = vperm.slane %v432_v31, 1  ;;  %v436_v37 = vperm.slane %v432_v31, 2  ;;  %v437_v48 = vperm.slane %v432_v31, 3  ;;  %v1296_v57 = vld [vmem:[%s1708_s6] ss:$0 sm:$0xff] }
  0x2a   : > { %840 = vmatpush.bf16.msrb.mxu3 %v1231_v0 }
  0x2b   : > { %380 = vmatpush.bf16.msra.mxu0 %v1202_v9 }
  0x2c   : > { %552 = vmatpush.bf16.msrb.mxu1 %v1031_v59 }
  0x2d   : > { %828 = vmatpush.bf16.msrb.mxu2 %v1222_v3 }
  0x2e   : > { %841 = vmatpush.bf16.msrb.mxu3 %v1230_v4 }
  0x2f   : > { %381 = vmatpush.bf16.msra.mxu0 %v1201_v10  ;;  %v1248_v10 = vld [vmem:[%s1707_s5 + $0xf8] sm:$0xff] }
  0x31   : > { %829 = vmatpush.bf16.msrb.mxu2 %v1221_v6 }
  0x32   : > { %842 = vmatpush.bf16.msrb.mxu3 %v1229_v7 }
  0x33   : > { %382 = vmatpush.bf16.msra.mxu0 %v1200_v11 }
  0x36   : > { %1015 = vmatmul.msk.bf16.vlgmr.msra.gmra.mxu0 %vm365_vm1, %v314_v12  ;;  %v1220_v12 = vld [vmem:[%s1707_s5 + $0x18] sm:$0xff] }
  0x37   : > { %852 = vmatpush.bf16.msrb.mxu0 %v1240_v62  ;;  %830 = vmatpush.bf16.msrb.mxu2 %v1220_v12 }
  0x3b   : > { %853 = vmatpush.bf16.msrb.mxu0 %v1239_v2 }
  0x3f   : > { %854 = vmatpush.bf16.msrb.mxu0 %v1238_v5 }
  0x43   : > { %855 = vmatpush.bf16.msrb.mxu0 %v1237_v8 }
  0x87   : > { %v330_v13 = vpop.permute.xlu0 %329 }
  0xb3   : > { %v384_v14 = vpop.f32.mrf.mxu0 }
  0xb4   : > { %v385_v15 = vadd.f32 %v384_v14, %v330_v13  ;;  %v1228_v13 = vld [vmem:[%s1707_s5 + $0x58] sm:$0xff] }
  0xb5   : > { %v1236_v14 = vld [vmem:[%s1707_s5 + $0x98] sm:$0xff]  ;;  %843 = vmatpush.bf16.msrb.mxu3 %v1228_v13 }
  0xb6   : > { %v388_v16 = vmax.f32 %v385_v15, 0.0  ;;  %v1247_v15 = vld [vmem:[%s1707_s5 + $0xf0] sm:$0xff]  ;;  %856 = vmatpush.bf16.msrb.mxu0 %v1236_v14 }
  0xb8   : > { %390 = vrot.lane.b32.xlu0 %v388_v16, %s1362_s26 }
  0xbb   : > { %v386_v17 = vpop.f32.mrf.mxu0 }
  0xbc   : > { %v1218_v17 = vld [vmem:[%s1707_s5 + $0x8] sm:$0xff] }
 0x12a   : > { %v391_v18 = vpop.permute.xlu0 %390 }
 0x12b   : > { %v393_v19 = vmax.f32 %v388_v16, %v391_v18  ;;  %v1219_v16 = vld [vmem:[%s1707_s5 + $0x10] sm:$0xff]  ;;  %v1246_v18 = vld [vmem:[%s1707_s5 + $0xe8] sm:$0xff] }
 0x12c   : > { %831 = vmatpush.bf16.msrb.mxu2 %v1219_v16 }
 0x12d   : > { %395 = vrot.lane.b32.xlu1 %v393_v19, %s1363_s10  ;;  %s297_s10 = sand.u32 1, %s1351_s28  }
 0x130   : > { %832 = vmatpush.bf16.msrb.mxu2 %v1218_v17 }
 0x19f   : > { %v396_v20 = vpop.permute.xlu1 %395 }
 0x1a0   : > { %v1474_v21 = vmax.f32 %v393_v19, %v396_v20  ;;  %v1227_v19 = vld [vmem:[%s1707_s5 + $0x50] sm:$0xff] }
 0x1a1   : > { %v1235_v20 = vld [vmem:[%s1707_s5 + $0x90] sm:$0xff]  ;;  %844 = vmatpush.bf16.msrb.mxu3 %v1227_v19 }
 0x1a2   : > { %406 = vrot.lane.b32.xlu2 %v1474_v21, %s1364_s12  ;;  %402 = vrot.lane.b32.xlu1 %v1474_v21, %s1365_s13  ;;  %400 = vst.msk [vmem:[#allocation2] sm:$0x1] %vm399_vm2, %v1474_v21  ;;  %s1197_s12 = sshll.u32 %s1433_s9, 1  ;;  %s993_s13 = sshll.u32 %s297_s10, 1 }
 0x1a3   : > { %857 = vmatpush.bf16.msrb.mxu0 %v1235_v20  ;;  %s903_s20 = scalar_lea.hbm %s1709_s7, %s1197_s12  ;;  %s299_s21 = scalar_lea.vmem [#allocation3], %s993_s13 }
 0x1a4   : > { %s905_s22 = sshll.u32 %s299_s21, 4  ;;  %s907_s23 = sshll.u32 %s903_s20, 4  ;;  %s906_s22 = int_to_ptr.vmem [resolvable:$true] %s905_s22  ;;  %s908_s23 = int_to_ptr.hbm [resolvable:$true] %s907_s23 }
 0x1a5   : > { %845 = vmatpush.bf16.msrb.mxu3 %v1226_v23  ;;  %s890_s9 = scalar_lea.sflag [#allocation4], %s297_s10  ;;  %s1311_s24 = sshra.s32 %s908_s23, 4  ;;  %s1312_s24 = int_to_ptr.hbm [resolvable:$true] %s1311_s24 }
 0x1a6   : > { %s1313_s25 = scalar_lea.hbm %s1312_s24, 2  ;;  %s1317_s13 = scalar_lea.hbm %s1709_s7, 4 }
 0x1a7   : > { %858 = vmatpush.bf16.msrb.mxu0 %v1234_v24  ;;  %p1314_p11 = scmp.ne.s32.totalorder %s1312_s24, %s1313_s25  ;;  %p1318_p0 = scmp.lt.s32.totalorder %s1312_s24, %s1709_s7 }
 0x1a8   : > { %p1319_p1 = scmp.lt.s32.totalorder %s1317_s13, %s1313_s25 }
 0x1a9   : > { %846 = vmatpush.bf16.msrb.mxu3 %v1225_v26  ;;  %p1315_p12 = pnand %p1314_p11, %p1450_p5 }
 0x1aa   : > { %412 = vrot.lane.b32.xlu2 %v1474_v21, %s1366_s18  ;;  %p1320_p2 = por %p1319_p1, %p1318_p0 }
 0x1ab   : > { %859 = vmatpush.bf16.msrb.mxu0 %v1233_v27  ;;  %p1316_p13 = pneg %p1315_p12 }
 0x1ad   : > { %p1321_p3 = pnand %p1320_p2, %p1316_p13 }
 0x1fc   : > { %v407_v49 = vpop.permute.xlu2 %406 }
 0x1fd   : > { %410 = vst.msk [vmem:[#allocation2 - $0x1] sm:$0x2] %vm409_vm3, %v407_v49 }
 0x204   : > { %v413_v55 = vpop.permute.xlu2 %412 }
 0x205   : > { %416 = vst.msk [vmem:[#allocation2 - $0x2] sm:$0x4] %vm415_vm4, %v413_v55 }
 0x214   : > { %v403_v1 = vpop.permute.xlu1 %402 }
 0x215   : > { %405 = vst.msk [vmem:[#allocation2 + $0x1] sm:$0x1] %vm399_vm2, %v403_v1 }
 0x216   : > { %411 = vst.msk [vmem:[#allocation2] sm:$0x2] %vm409_vm3, %v1474_v21  ;;  %v1217_v21 = vld [vmem:[%s1707_s5] sm:$0xff] }
 0x217   : > { %417 = vst.msk [vmem:[#allocation2 - $0x1] sm:$0x4] %vm415_vm4, %v407_v49  ;;  %833 = vmatpush.bf16.msrb.mxu2 %v1217_v21 }
 0x21e   : > { %v418_v9 = vld [vmem:[#allocation2] sm:$0x3] }
 0x21f   : > { %v419_v11 = vpack.c.bf16 %v418_v9, %v418_v9 }
 0x221   : > { %1064 = vmatmul.msk.bf16.vlgmr.msra.gmra.mxu1 %vm502_vm5, %v419_v11  ;;  %1065 = vmatmul.msk.bf16.vlgmr.msra.gmra.mxu2 %vm502_vm5, %v419_v11 }
 0x222   : > { %1066 = vmatmul.msk.bf16.vlgmr.msra.gmra.mxu3 %vm502_vm5, %v419_v11  ;;  %865 = vmatpush.bf16.msra.mxu1 %v1248_v10 }
 0x226   : > { %866 = vmatpush.bf16.msra.mxu1 %v1247_v15 }
 0x22a   : > { %867 = vmatpush.bf16.msra.mxu1 %v1246_v18 }
 0x22e   : > { %868 = vmatpush.bf16.msra.mxu1 %v1245_v22 }
 0x231   : > { %1067 = vmatmul.msk.bf16.vlgmr.msrb.gmra.mxu1 %vm502_vm5, %v419_v11 }
 0x232   : > { %869 = vmatpush.bf16.msra.mxu1 %v1244_v25 }
 0x236   : > { %870 = vmatpush.bf16.msra.mxu1 %v1243_v28 }
 0x23a   : > { %871 = vmatpush.bf16.msra.mxu1 %v1242_v29 }
 0x23e   : > { %872 = vmatpush.bf16.msra.mxu1 %v1241_v30 }
 0x29e   : > { %v515_v33 = vpop.f32.mrf.mxu1 }
 0x29f   : > { %v516_v34 = vadd.f32 %v515_v33, %v434_v32 }
 0x2a1   : > { %v558_v35 = vmax.f32 %v516_v34, 0.0 }
 0x2a3   : > { %v562_v38 = vpack.c.bf16 %v558_v35, %v558_v35 }
 0x2a4   : > { %v528_v39 = vpop.f32.mrf.mxu2 }
 0x2a5   : > { %v529_v40 = vadd.f32 %v528_v39, %v435_v36  ;;  %v541_v41 = vpop.f32.mrf.mxu3  ;;  %834 = vmatmul.bf16.vlgmr.msrb.gmra.mxu2 %v562_v38 }
 0x2a6   : > { %v542_v42 = vadd.f32 %v541_v41, %v436_v37  ;;  %v517_v43 = vpop.f32.mrf.mxu1 }
 0x2a7   : > { %v559_v44 = vmax.f32 %v529_v40, 0.0 }
 0x2a8   : > { %v560_v45 = vmax.f32 %v542_v42, 0.0 }
 0x2a9   : > { %v563_v46 = vpack.c.bf16 %v559_v44, %v559_v44 }
 0x2aa   : > { %v564_v47 = vpack.c.bf16 %v560_v45, %v560_v45 }
 0x2ab   : > { %847 = vmatmul.bf16.vlgmr.msrb.gmra.mxu3 %v563_v46 }
 0x2ac   : > { %860 = vmatmul.bf16.vlgmr.msrb.gmra.mxu0 %v564_v47  ;;  %v530_v49 = vpop.f32.mrf.mxu2 }
 0x2ad   : > { %v543_v50 = vpop.f32.mrf.mxu3 }
 0x2ae   : > { %v554_v51 = vpop.f32.mrf.mxu1 }
 0x2af   : > { %v555_v52 = vadd.f32 %v554_v51, %v437_v48 }
 0x2b1   : > { %v561_v53 = vmax.f32 %v555_v52, 0.0 }
 0x2b3   : > { %v565_v54 = vpack.c.bf16 %v561_v53, %v561_v53 }
 0x2b5   : > { %873 = vmatmul.bf16.vlgmr.msra.gmra.mxu1 %v565_v54 }
 0x2b6   : > { %v556_v55 = vpop.f32.mrf.mxu1 }
 0x328   : > { %v835_v56 = vpop.f32.mrf.mxu2 }
 0x329   : > { %v861_v58 = vpop.f32.mrf.mxu0  ;;  %v836_v59 = vadd.f32 %v1296_v57, %v835_v56 }
 0x32e   : > { %v848_v60 = vpop.f32.mrf.mxu3 }
 0x32f   : > { %v849_v61 = vadd.f32 %v848_v60, %v836_v59 }
 0x330   : > { %v837_v62 = vpop.f32.mrf.mxu2 }
 0x331   : > { %v863_v63 = vpop.f32.mrf.mxu0  ;;  %v862_v0 = vadd.f32 %v861_v58, %v849_v61 }
 0x332   : > { %v874_v1 = vpop.f32.mrf.mxu1 }
 0x333   : > { %v875_v2 = vadd.f32 %v874_v1, %v862_v0 }
 0x335   : > { %878 = vst [vmem:[%s299_s21] sm:$0x3] %v875_v2  ;;  %v879_v3 = vmax.f32 %v875_v2, 0.0 }
 0x336   : > { %v850_v4 = vpop.f32.mrf.mxu3 }
 0x337   : > { %1324 = shalt.err (!%p1321_p3)
}
 0x338   : > { %1250 = dma.vmem_to_hbm [thread:$0]  (%p1450_p5), %s906_s22, 32, %s908_s23, %s890_s9   ;;  %v881_v5 = vsel %vm880_vm6, %v879_v3, 0.0 }
 0x339   : > { %v882_v6 = vrot.slane %v881_v5, 4  ;;  %s312_s21 = scalar_lea.vmem %s1710_s8, %s1462_s17 }
 0x33a   : > { %v876_v8 = vpop.f32.mrf.mxu1 }
 0x33b   : > { %v883_v7 = vadd.f32 %v882_v6, %v881_v5 }
 0x33d   : > { %v884_v9 = vrot.slane %v883_v7, 2 }
 0x33f   : > { %v885_v10 = vadd.f32 %v884_v9, %v883_v7 }
 0x341   : > { %v886_v11 = vrot.slane %v885_v10, 1 }
 0x343   : > { %v887_v12 = vadd.f32 %v886_v11, %v885_v10 }
 0x345   : > { %888 = vst [vmem:[%s312_s21] sm:$0x1] %v887_v12 }
 0x346 PF: > { %p1256_p4 = scmp.ge.s32.totalorder %s1359_s30, 2  ;;  %s922_s15 = sand.u32 1, %s1347_s27  }
 0x347   : > { %s923_s22 = scalar_lea.sflag [#allocation4], %s922_s15 }
 0x348   : > { %p1253_p5 = pnand %p1256_p4, %p1454_p6 }
 0x34a   : > { %p1254_p7 = pneg %p1253_p5 }
 0x34c   : > { %1342 = dma.done.wait (%p1254_p7), %s923_s22, 32  }
 0x34d   : > { %1344 = vsyncadd (%p1254_p7), %s923_s22, 4294967264  ;;  %p19_p8 = scmp.ge.s32.totalorder %s1437_s11, 4   ;;  %s1713_s27 = smov %s1351_s28 }
 0x34e   : > { %s1714_s28 = smov %s1355_s29  ;;  %s1715_s29 = smov %s1448_s14 }
 0x34f   : > { %s1716_s30 = smov %s1437_s11  ;;  %21 = sbr.rel (!%p19_p8) target bundleno = 3 (0x3), region = 95 }
 0x354   :  { %935 = vsyncpa [#allocation4], 1 }
 0x355   :  { %937 = vsyncpa [#allocation4 + $0x1], 1 }

</bundles_post_ra>
